<compile_context>
chip_gen: v6e
topology: v6e:2x2x1
jax: 0.10.0
libtpu: 0.0.40
codegen_flags: <defaults>
</compile_context>

<pallas_src>
import jax
import jax.numpy as jnp
from jax.experimental import pallas as pl
from jax.experimental.pallas import tpu as pltpu


def _pick_row_tile(ho, wo, max_rows=1024):
    """Largest divisor of `ho` whose tile has at most `max_rows` output rows."""
    th = 1
    for d in range(1, ho + 1):
        if ho % d == 0 and d * wo <= max_rows:
            th = d
    return th


# ----------------------------------------------------------------------------
# Pallas kernel: fused 3x3 / stride-2 / pad-1 conv + bias + ReLU
# for one (batch, output-row-tile) grid step.
# ----------------------------------------------------------------------------
def _stage_kernel(p00m_ref, p00h_ref, p01m_ref, p01h_ref, p10m_ref, p11m_ref,
                  w_ref, b_ref, o_ref):
    # p00m/p01m/p10m/p11m: (1, TH, Wq, Cin)  stride-2 phases of the padded input
    # p00h/p01h:           (1, 1,  Wq, Cin)  halo row (even-phase row (i+1)*TH)
    # w_ref:               (9, Cin, Cout)    per-tap weights, VMEM-resident
    # b_ref:               (1, Cout)
    # o_ref:               (1, TH, Wo, Cout)
    th = o_ref.shape[1]
    wo = o_ref.shape[2]
    cout = o_ref.shape[3]
    cin = w_ref.shape[1]

    even = (p00m_ref[0], p01m_ref[0])     # row-parity 0, col-parity 0 / 1
    halo = (p00h_ref[0], p01h_ref[0])
    odd = (p10m_ref[0], p11m_ref[0])      # row-parity 1, col-parity 0 / 1

    def even_next(q):
        # even-phase rows 1..TH (needs the one-row halo)
        return jnp.concatenate([even[q], halo[q]], axis=0)[1:]

    rows_for = {
        (0, 0): even[0], (0, 1): even[1],
        (1, 0): odd[0],  (1, 1): odd[1],
        (2, 0): even_next(0), (2, 1): even_next(1),
    }

    acc = jnp.zeros((th * wo, cout), jnp.float32)
    for kh in range(3):
        for kw in range(3):
            rows = rows_for[(kh, kw & 1)]                 # (TH, Wq, Cin)
            c0 = kw // 2
            tap = rows[:, c0:c0 + wo, :].reshape(th * wo, cin)
            acc = acc + jnp.dot(tap, w_ref[kh * 3 + kw],
                                preferred_element_type=jnp.float32)

    acc = acc + b_ref[...]
    o_ref[0] = jnp.maximum(acc, 0.0).reshape(th, wo, cout).astype(o_ref.dtype)


def _conv3x3_s2_relu_nhwc(x, w, b):
    """3x3 conv, stride 2, padding 1, + bias + ReLU.

    x: (B, H, W, Cin) f32;  w: (Cout, Cin, 3, 3) f32 (OIHW);  b: (Cout,) f32
    returns: (B, Ho, Wo, Cout) f32
    """
    B, H, W, Cin = x.shape
    Cout = w.shape[0]
    assert H % 2 == 0 and W % 2 == 0, "synthetic encoder expects even H, W"
    Ho, Wo = H // 2, W // 2
    Wq = Wo + 1

    # Pad once and split into the four stride-2 phases (a 1x rearrangement,
    # done by XLA).  Every 3x3 tap becomes a unit-stride slice of one phase
    # inside the kernel -- no 9x im2col matrix in HBM.
    xp = jnp.pad(x, ((0, 0), (1, 1), (1, 1), (0, 0)))
    p00 = xp[:, 0::2, 0::2, :]   # (B, Ho+1, Wq, Cin)
    p01 = xp[:, 0::2, 1::2, :]
    p10 = xp[:, 1::2, 0::2, :]
    p11 = xp[:, 1::2, 1::2, :]

    # (Cout, Cin, 3, 3) -> (9, Cin, Cout): per-tap weight matrices.
    w_mat = jnp.transpose(w, (2, 3, 1, 0)).reshape(9, Cin, Cout)
    b_row = b.reshape(1, Cout)

    TH = _pick_row_tile(Ho, Wo)
    n_row_tiles = Ho // TH

    main_spec = pl.BlockSpec((1, TH, Wq, Cin), lambda bb, ii: (bb, ii, 0, 0))
    halo_spec = pl.BlockSpec((1, 1, Wq, Cin),
                             lambda bb, ii: (bb, (ii + 1) * TH, 0, 0))

    out = pl.pallas_call(
        _stage_kernel,
        out_shape=jax.ShapeDtypeStruct((B, Ho, Wo, Cout), jnp.float32),
        grid=(B, n_row_tiles),
        in_specs=[
            main_spec, halo_spec,                                     # p00 + halo
            main_spec, halo_spec,                                     # p01 + halo
            main_spec, main_spec,                                     # p10, p11
            pl.BlockSpec((9, Cin, Cout), lambda bb, ii: (0, 0, 0)),   # resident W
            pl.BlockSpec((1, Cout), lambda bb, ii: (0, 0)),           # resident b
        ],
        out_specs=pl.BlockSpec((1, TH, Wo, Cout),
                               lambda bb, ii: (bb, ii, 0, 0)),
        compiler_params=pltpu.CompilerParams(
            dimension_semantics=("parallel", "parallel"),
        ),
    )(p00, p00, p01, p01, p10, p11, w_mat, b_row)

    return out


# ----------------------------------------------------------------------------
# Synthetic TimmEncoder
# ----------------------------------------------------------------------------
class TimmEncoderPallas:
    """Mirrors TimmEncoder.forward: returns [x] + per-stage features (NCHW)."""

    # TODO(synk): the real module instantiates an arbitrary pretrained timm
    # backbone; here the backbone is a fixed synthetic conv pyramid since
    # checkpoint loading is out of scope.
    def __init__(self, in_channels=3, depth=3, stage_channels=(8, 16, 32),
                 key=jax.random.PRNGKey(0)):
        assert depth == len(stage_channels)
        self.in_channels = in_channels
        self.depth = depth
        self.indices = tuple(range(depth))
        self.output_stride = 32
        self.out_channels = [in_channels] + list(stage_channels)
        self.reductions = [1] + [2 ** (i + 1) for i in range(depth)]

        self.weights = []
        self.biases = []
        cin = in_channels
        for cout in stage_channels:
            key, kw_, kb_ = jax.random.split(key, 3)
            fan_in = cin * 9
            w = jax.random.normal(kw_, (cout, cin, 3, 3), jnp.float32) / jnp.sqrt(fan_in)
            bb = 0.01 * jax.random.normal(kb_, (cout,), jnp.float32)
            self.weights.append(w)
            self.biases.append(bb)
            cin = cout

    def forward(self, x_nchw):
        # x_nchw: (B, C, H, W) -- PyTorch layout.
        feats = [x_nchw]
        h = jnp.transpose(x_nchw, (0, 2, 3, 1))  # NCHW -> NHWC for the kernels
        for w, b in zip(self.weights, self.biases):
            h = _conv3x3_s2_relu_nhwc(h, w, b)   # NHWC feeds the next stage
            # forward() guarantees channel-first outputs ('b h w c -> b c h w');
            # the NCHW transpose only feeds the Python output list.
            feats.append(jnp.transpose(h, (0, 3, 1, 2)))
        return feats

    def __call__(self, x):
        return self.forward(x)


# ----------------------------------------------------------------------------
# Pure-JAX reference (correctness check of the Pallas path)
# ----------------------------------------------------------------------------
def _reference_forward(enc, x_nchw):
    feats = [x_nchw]
    h = x_nchw
    for w, b in zip(enc.weights, enc.biases):
        h = jax.lax.conv_general_dilated(
            h, w, window_strides=(2, 2), padding=((1, 1), (1, 1)),
            dimension_numbers=("NCHW", "OIHW", "NCHW"))
        h = jnp.maximum(h + b.reshape(1, -1, 1, 1), 0.0)
        feats.append(h)
    return feats


if __name__ == "__main__":
    key = jax.random.PRNGKey(0)
    k_x, k_p = jax.random.split(key)

    B, C, H, W = 2, 4, 16, 16
    x = jax.random.normal(k_x, (B, C, H, W), jnp.float32)

    enc = TimmEncoderPallas(in_channels=C, depth=3, stage_channels=(8, 16, 32),
                            key=k_p)

    feats = enc(x)
    feats = [jax.block_until_ready(f) for f in feats]

    # Shape contract of TimmEncoder.forward
    expected_shapes = [
        (B, enc.out_channels[i], H // enc.reductions[i], W // enc.reductions[i])
        for i in range(len(enc.out_channels))
    ]
    assert [tuple(f.shape) for f in feats] == expected_shapes, \
        ([tuple(f.shape) for f in feats], expected_shapes)

    # Numerical check vs. plain-JAX conv reference
    ref = _reference_forward(enc, x)
    for f, r in zip(feats, ref):
        assert jnp.allclose(f, r, atol=1e-4, rtol=1e-4)

    print("KERNEL_OK")
</pallas_src>

<mosaic_0001>
module attributes {stable_mosaic.version = 11 : i64} {
  func.func @_stage_kernel(%arg0: i32, %arg1: i32, %arg2: memref<1x8x9x4xf32, #tpu.memory_space<vmem>>, %arg3: memref<1x1x9x4xf32, #tpu.memory_space<vmem>>, %arg4: memref<1x8x9x4xf32, #tpu.memory_space<vmem>>, %arg5: memref<1x1x9x4xf32, #tpu.memory_space<vmem>>, %arg6: memref<1x8x9x4xf32, #tpu.memory_space<vmem>>, %arg7: memref<1x8x9x4xf32, #tpu.memory_space<vmem>>, %arg8: memref<9x4x8xf32, #tpu.memory_space<vmem>>, %arg9: memref<1x8xf32, #tpu.memory_space<vmem>>, %arg10: memref<1x8x8x8xf32, #tpu.memory_space<vmem>>) attributes {dimension_semantics = [#tpu.dimension_semantics<parallel>, #tpu.dimension_semantics<parallel>], iteration_bounds = array<i64: 2, 1>, scalar_prefetch = 0 : i64, scratch_operands = 0 : i64, tpu.core_type = #tpu.core_type<tc>, window_params = [{transform_indices = @transform_0, window_bounds = array<i64: 1, 8, 9, 4>}, {transform_indices = @transform_1, window_bounds = array<i64: 1, 1, 9, 4>}, {transform_indices = @transform_2, window_bounds = array<i64: 1, 8, 9, 4>}, {transform_indices = @transform_3, window_bounds = array<i64: 1, 1, 9, 4>}, {transform_indices = @transform_4, window_bounds = array<i64: 1, 8, 9, 4>}, {transform_indices = @transform_5, window_bounds = array<i64: 1, 8, 9, 4>}, {pipeline_mode = #tpu.pipeline_mode<synchronous>, transform_indices = @transform_6, window_bounds = array<i64: 9, 4, 8>}, {pipeline_mode = #tpu.pipeline_mode<synchronous>, transform_indices = @transform_7, window_bounds = array<i64: 1, 8>}, {transform_indices = @transform_8, window_bounds = array<i64: 1, 8, 8, 8>}]} {
    %c0 = arith.constant 0 : index
    %c0_0 = arith.constant 0 : index
    %c0_1 = arith.constant 0 : index
    %c0_2 = arith.constant 0 : index
    %0 = vector.load %arg2[%c0, %c0_0, %c0_1, %c0_2] : memref<1x8x9x4xf32, #tpu.memory_space<vmem>>, vector<1x8x9x4xf32>
    %1 = vector.shape_cast %0 : vector<1x8x9x4xf32> to vector<8x9x4xf32>
    %c0_3 = arith.constant 0 : index
    %c0_4 = arith.constant 0 : index
    %c0_5 = arith.constant 0 : index
    %c0_6 = arith.constant 0 : index
    %2 = vector.load %arg4[%c0_3, %c0_4, %c0_5, %c0_6] : memref<1x8x9x4xf32, #tpu.memory_space<vmem>>, vector<1x8x9x4xf32>
    %3 = vector.shape_cast %2 : vector<1x8x9x4xf32> to vector<8x9x4xf32>
    %c0_7 = arith.constant 0 : index
    %c0_8 = arith.constant 0 : index
    %c0_9 = arith.constant 0 : index
    %c0_10 = arith.constant 0 : index
    %4 = vector.load %arg3[%c0_7, %c0_8, %c0_9, %c0_10] : memref<1x1x9x4xf32, #tpu.memory_space<vmem>>, vector<1x1x9x4xf32>
    %5 = vector.shape_cast %4 : vector<1x1x9x4xf32> to vector<1x9x4xf32>
    %c0_11 = arith.constant 0 : index
    %c0_12 = arith.constant 0 : index
    %c0_13 = arith.constant 0 : index
    %c0_14 = arith.constant 0 : index
    %6 = vector.load %arg5[%c0_11, %c0_12, %c0_13, %c0_14] : memref<1x1x9x4xf32, #tpu.memory_space<vmem>>, vector<1x1x9x4xf32>
    %7 = vector.shape_cast %6 : vector<1x1x9x4xf32> to vector<1x9x4xf32>
    %c0_15 = arith.constant 0 : index
    %c0_16 = arith.constant 0 : index
    %c0_17 = arith.constant 0 : index
    %c0_18 = arith.constant 0 : index
    %8 = vector.load %arg6[%c0_15, %c0_16, %c0_17, %c0_18] : memref<1x8x9x4xf32, #tpu.memory_space<vmem>>, vector<1x8x9x4xf32>
    %9 = vector.shape_cast %8 : vector<1x8x9x4xf32> to vector<8x9x4xf32>
    %c0_19 = arith.constant 0 : index
    %c0_20 = arith.constant 0 : index
    %c0_21 = arith.constant 0 : index
    %c0_22 = arith.constant 0 : index
    %10 = vector.load %arg7[%c0_19, %c0_20, %c0_21, %c0_22] : memref<1x8x9x4xf32, #tpu.memory_space<vmem>>, vector<1x8x9x4xf32>
    %11 = vector.shape_cast %10 : vector<1x8x9x4xf32> to vector<8x9x4xf32>
    %12 = tpu.concatenate %1, %5 in 0 : vector<8x9x4xf32>, vector<1x9x4xf32> -> vector<9x9x4xf32>
    %13 = vector.extract_strided_slice %12 {offsets = [1, 0, 0], sizes = [8, 9, 4], strides = [1, 1, 1]} : vector<9x9x4xf32> to vector<8x9x4xf32>
    %14 = tpu.concatenate %3, %7 in 0 : vector<8x9x4xf32>, vector<1x9x4xf32> -> vector<9x9x4xf32>
    %15 = vector.extract_strided_slice %14 {offsets = [1, 0, 0], sizes = [8, 9, 4], strides = [1, 1, 1]} : vector<9x9x4xf32> to vector<8x9x4xf32>
    %cst = arith.constant 0.000000e+00 : f32
    %16 = vector.broadcast %cst : f32 to vector<64x8xf32>
    %17 = vector.extract_strided_slice %1 {offsets = [0, 0, 0], sizes = [8, 8, 4], strides = [1, 1, 1]} : vector<8x9x4xf32> to vector<8x8x4xf32>
    %18 = vector.shape_cast %17 : vector<8x8x4xf32> to vector<64x4xf32>
    %c0_23 = arith.constant 0 : index
    %c0_24 = arith.constant 0 : index
    %c0_25 = arith.constant 0 : index
    %19 = vector.load %arg8[%c0_23, %c0_24, %c0_25] : memref<9x4x8xf32, #tpu.memory_space<vmem>>, vector<1x4x8xf32>
    %20 = vector.shape_cast %19 : vector<1x4x8xf32> to vector<4x8xf32>
    %cst_26 = arith.constant dense<0.000000e+00> : vector<64x8xf32>
    %21 = tpu.matmul %18, %20, %cst_26 {dimension_numbers = #tpu.dot_dimension_numbers<[1], [0], [0], [1], [0, 0, 1, 1], [], []>} : vector<64x4xf32>, vector<4x8xf32>, vector<64x8xf32> -> vector<64x8xf32>
    %22 = arith.addf %16, %21 : vector<64x8xf32>
    %23 = vector.extract_strided_slice %3 {offsets = [0, 0, 0], sizes = [8, 8, 4], strides = [1, 1, 1]} : vector<8x9x4xf32> to vector<8x8x4xf32>
    %24 = vector.shape_cast %23 : vector<8x8x4xf32> to vector<64x4xf32>
    %c1 = arith.constant 1 : index
    %c0_27 = arith.constant 0 : index
    %c0_28 = arith.constant 0 : index
    %25 = vector.load %arg8[%c1, %c0_27, %c0_28] : memref<9x4x8xf32, #tpu.memory_space<vmem>>, vector<1x4x8xf32>
    %26 = vector.shape_cast %25 : vector<1x4x8xf32> to vector<4x8xf32>
    %cst_29 = arith.constant dense<0.000000e+00> : vector<64x8xf32>
    %27 = tpu.matmul %24, %26, %cst_29 {dimension_numbers = #tpu.dot_dimension_numbers<[1], [0], [0], [1], [0, 0, 1, 1], [], []>} : vector<64x4xf32>, vector<4x8xf32>, vector<64x8xf32> -> vector<64x8xf32>
    %28 = arith.addf %22, %27 : vector<64x8xf32>
    %29 = vector.extract_strided_slice %1 {offsets = [0, 1, 0], sizes = [8, 8, 4], strides = [1, 1, 1]} : vector<8x9x4xf32> to vector<8x8x4xf32>
    %30 = vector.shape_cast %29 : vector<8x8x4xf32> to vector<64x4xf32>
    %c2 = arith.constant 2 : index
    %c0_30 = arith.constant 0 : index
    %c0_31 = arith.constant 0 : index
    %31 = vector.load %arg8[%c2, %c0_30, %c0_31] : memref<9x4x8xf32, #tpu.memory_space<vmem>>, vector<1x4x8xf32>
    %32 = vector.shape_cast %31 : vector<1x4x8xf32> to vector<4x8xf32>
    %cst_32 = arith.constant dense<0.000000e+00> : vector<64x8xf32>
    %33 = tpu.matmul %30, %32, %cst_32 {dimension_numbers = #tpu.dot_dimension_numbers<[1], [0], [0], [1], [0, 0, 1, 1], [], []>} : vector<64x4xf32>, vector<4x8xf32>, vector<64x8xf32> -> vector<64x8xf32>
    %34 = arith.addf %28, %33 : vector<64x8xf32>
    %35 = vector.extract_strided_slice %9 {offsets = [0, 0, 0], sizes = [8, 8, 4], strides = [1, 1, 1]} : vector<8x9x4xf32> to vector<8x8x4xf32>
    %36 = vector.shape_cast %35 : vector<8x8x4xf32> to vector<64x4xf32>
    %c3 = arith.constant 3 : index
    %c0_33 = arith.constant 0 : index
    %c0_34 = arith.constant 0 : index
    %37 = vector.load %arg8[%c3, %c0_33, %c0_34] : memref<9x4x8xf32, #tpu.memory_space<vmem>>, vector<1x4x8xf32>
    %38 = vector.shape_cast %37 : vector<1x4x8xf32> to vector<4x8xf32>
    %cst_35 = arith.constant dense<0.000000e+00> : vector<64x8xf32>
    %39 = tpu.matmul %36, %38, %cst_35 {dimension_numbers = #tpu.dot_dimension_numbers<[1], [0], [0], [1], [0, 0, 1, 1], [], []>} : vector<64x4xf32>, vector<4x8xf32>, vector<64x8xf32> -> vector<64x8xf32>
    %40 = arith.addf %34, %39 : vector<64x8xf32>
    %41 = vector.extract_strided_slice %11 {offsets = [0, 0, 0], sizes = [8, 8, 4], strides = [1, 1, 1]} : vector<8x9x4xf32> to vector<8x8x4xf32>
    %42 = vector.shape_cast %41 : vector<8x8x4xf32> to vector<64x4xf32>
    %c4 = arith.constant 4 : index
    %c0_36 = arith.constant 0 : index
    %c0_37 = arith.constant 0 : index
    %43 = vector.load %arg8[%c4, %c0_36, %c0_37] : memref<9x4x8xf32, #tpu.memory_space<vmem>>, vector<1x4x8xf32>
    %44 = vector.shape_cast %43 : vector<1x4x8xf32> to vector<4x8xf32>
    %cst_38 = arith.constant dense<0.000000e+00> : vector<64x8xf32>
    %45 = tpu.matmul %42, %44, %cst_38 {dimension_numbers = #tpu.dot_dimension_numbers<[1], [0], [0], [1], [0, 0, 1, 1], [], []>} : vector<64x4xf32>, vector<4x8xf32>, vector<64x8xf32> -> vector<64x8xf32>
    %46 = arith.addf %40, %45 : vector<64x8xf32>
    %47 = vector.extract_strided_slice %9 {offsets = [0, 1, 0], sizes = [8, 8, 4], strides = [1, 1, 1]} : vector<8x9x4xf32> to vector<8x8x4xf32>
    %48 = vector.shape_cast %47 : vector<8x8x4xf32> to vector<64x4xf32>
    %c5 = arith.constant 5 : index
    %c0_39 = arith.constant 0 : index
    %c0_40 = arith.constant 0 : index
    %49 = vector.load %arg8[%c5, %c0_39, %c0_40] : memref<9x4x8xf32, #tpu.memory_space<vmem>>, vector<1x4x8xf32>
    %50 = vector.shape_cast %49 : vector<1x4x8xf32> to vector<4x8xf32>
    %cst_41 = arith.constant dense<0.000000e+00> : vector<64x8xf32>
    %51 = tpu.matmul %48, %50, %cst_41 {dimension_numbers = #tpu.dot_dimension_numbers<[1], [0], [0], [1], [0, 0, 1, 1], [], []>} : vector<64x4xf32>, vector<4x8xf32>, vector<64x8xf32> -> vector<64x8xf32>
    %52 = arith.addf %46, %51 : vector<64x8xf32>
    %53 = vector.extract_strided_slice %13 {offsets = [0, 0, 0], sizes = [8, 8, 4], strides = [1, 1, 1]} : vector<8x9x4xf32> to vector<8x8x4xf32>
    %54 = vector.shape_cast %53 : vector<8x8x4xf32> to vector<64x4xf32>
    %c6 = arith.constant 6 : index
    %c0_42 = arith.constant 0 : index
    %c0_43 = arith.constant 0 : index
    %55 = vector.load %arg8[%c6, %c0_42, %c0_43] : memref<9x4x8xf32, #tpu.memory_space<vmem>>, vector<1x4x8xf32>
    %56 = vector.shape_cast %55 : vector<1x4x8xf32> to vector<4x8xf32>
    %cst_44 = arith.constant dense<0.000000e+00> : vector<64x8xf32>
    %57 = tpu.matmul %54, %56, %cst_44 {dimension_numbers = #tpu.dot_dimension_numbers<[1], [0], [0], [1], [0, 0, 1, 1], [], []>} : vector<64x4xf32>, vector<4x8xf32>, vector<64x8xf32> -> vector<64x8xf32>
    %58 = arith.addf %52, %57 : vector<64x8xf32>
    %59 = vector.extract_strided_slice %15 {offsets = [0, 0, 0], sizes = [8, 8, 4], strides = [1, 1, 1]} : vector<8x9x4xf32> to vector<8x8x4xf32>
    %60 = vector.shape_cast %59 : vector<8x8x4xf32> to vector<64x4xf32>
    %c7 = arith.constant 7 : index
    %c0_45 = arith.constant 0 : index
    %c0_46 = arith.constant 0 : index
    %61 = vector.load %arg8[%c7, %c0_45, %c0_46] : memref<9x4x8xf32, #tpu.memory_space<vmem>>, vector<1x4x8xf32>
    %62 = vector.shape_cast %61 : vector<1x4x8xf32> to vector<4x8xf32>
    %cst_47 = arith.constant dense<0.000000e+00> : vector<64x8xf32>
    %63 = tpu.matmul %60, %62, %cst_47 {dimension_numbers = #tpu.dot_dimension_numbers<[1], [0], [0], [1], [0, 0, 1, 1], [], []>} : vector<64x4xf32>, vector<4x8xf32>, vector<64x8xf32> -> vector<64x8xf32>
    %64 = arith.addf %58, %63 : vector<64x8xf32>
    %65 = vector.extract_strided_slice %13 {offsets = [0, 1, 0], sizes = [8, 8, 4], strides = [1, 1, 1]} : vector<8x9x4xf32> to vector<8x8x4xf32>
    %66 = vector.shape_cast %65 : vector<8x8x4xf32> to vector<64x4xf32>
    %c8 = arith.constant 8 : index
    %c0_48 = arith.constant 0 : index
    %c0_49 = arith.constant 0 : index
    %67 = vector.load %arg8[%c8, %c0_48, %c0_49] : memref<9x4x8xf32, #tpu.memory_space<vmem>>, vector<1x4x8xf32>
    %68 = vector.shape_cast %67 : vector<1x4x8xf32> to vector<4x8xf32>
    %cst_50 = arith.constant dense<0.000000e+00> : vector<64x8xf32>
    %69 = tpu.matmul %66, %68, %cst_50 {dimension_numbers = #tpu.dot_dimension_numbers<[1], [0], [0], [1], [0, 0, 1, 1], [], []>} : vector<64x4xf32>, vector<4x8xf32>, vector<64x8xf32> -> vector<64x8xf32>
    %70 = arith.addf %64, %69 : vector<64x8xf32>
    %c0_51 = arith.constant 0 : index
    %c0_52 = arith.constant 0 : index
    %71 = vector.load %arg9[%c0_51, %c0_52] : memref<1x8xf32, #tpu.memory_space<vmem>>, vector<1x8xf32>
    %72 = vector.broadcast %71 : vector<1x8xf32> to vector<64x8xf32>
    %73 = arith.addf %70, %72 : vector<64x8xf32>
    %cst_53 = arith.constant 0.000000e+00 : f32
    %74 = vector.broadcast %cst_53 : f32 to vector<64x8xf32>
    %75 = arith.maximumf %73, %74 : vector<64x8xf32>
    %76 = vector.shape_cast %75 : vector<64x8xf32> to vector<8x8x8xf32>
    %c0_54 = arith.constant 0 : index
    %c0_55 = arith.constant 0 : index
    %c0_56 = arith.constant 0 : index
    %c0_57 = arith.constant 0 : index
    %77 = vector.load %arg10[%c0_54, %c0_55, %c0_56, %c0_57] : memref<1x8x8x8xf32, #tpu.memory_space<vmem>>, vector<1x8x8x8xf32>
    %78 = vector.shape_cast %77 : vector<1x8x8x8xf32> to vector<8x8x8xf32>
    %79 = vector.shape_cast %76 : vector<8x8x8xf32> to vector<1x8x8x8xf32>
    tpu.vector_store %arg10[%c0_54, %c0_55, %c0_56, %c0_57], %79 {strides = array<i32>} : memref<1x8x8x8xf32, #tpu.memory_space<vmem>>, vector<1x8x8x8xf32>,
    return
  }
  func.func @transform_0(%arg0: i32, %arg1: i32) -> (i32, i32, i32, i32) {
    %c0_i32 = arith.constant 0 : i32
    %c0_i32_0 = arith.constant 0 : i32
    %c0_i32_1 = arith.constant 0 : i32
    return %arg0, %arg1, %c0_i32, %c0_i32_0 : i32, i32, i32, i32
  }
  func.func @transform_1(%arg0: i32, %arg1: i32) -> (i32, i32, i32, i32) {
    %c1_i32 = arith.constant 1 : i32
    %0 = arith.addi %arg1, %c1_i32 : i32
    %c8_i32 = arith.constant 8 : i32
    %1 = arith.muli %0, %c8_i32 : i32
    %c0_i32 = arith.constant 0 : i32
    %c0_i32_0 = arith.constant 0 : i32
    %c0_i32_1 = arith.constant 0 : i32
    return %arg0, %1, %c0_i32, %c0_i32_0 : i32, i32, i32, i32
  }
  func.func @transform_2(%arg0: i32, %arg1: i32) -> (i32, i32, i32, i32) {
    %c0_i32 = arith.constant 0 : i32
    %c0_i32_0 = arith.constant 0 : i32
    %c0_i32_1 = arith.constant 0 : i32
    return %arg0, %arg1, %c0_i32, %c0_i32_0 : i32, i32, i32, i32
  }
  func.func @transform_3(%arg0: i32, %arg1: i32) -> (i32, i32, i32, i32) {
    %c1_i32 = arith.constant 1 : i32
    %0 = arith.addi %arg1, %c1_i32 : i32
    %c8_i32 = arith.constant 8 : i32
    %1 = arith.muli %0, %c8_i32 : i32
    %c0_i32 = arith.constant 0 : i32
    %c0_i32_0 = arith.constant 0 : i32
    %c0_i32_1 = arith.constant 0 : i32
    return %arg0, %1, %c0_i32, %c0_i32_0 : i32, i32, i32, i32
  }
  func.func @transform_4(%arg0: i32, %arg1: i32) -> (i32, i32, i32, i32) {
    %c0_i32 = arith.constant 0 : i32
    %c0_i32_0 = arith.constant 0 : i32
    %c0_i32_1 = arith.constant 0 : i32
    return %arg0, %arg1, %c0_i32, %c0_i32_0 : i32, i32, i32, i32
  }
  func.func @transform_5(%arg0: i32, %arg1: i32) -> (i32, i32, i32, i32) {
    %c0_i32 = arith.constant 0 : i32
    %c0_i32_0 = arith.constant 0 : i32
    %c0_i32_1 = arith.constant 0 : i32
    return %arg0, %arg1, %c0_i32, %c0_i32_0 : i32, i32, i32, i32
  }
  func.func @transform_6(%arg0: i32, %arg1: i32) -> (i32, i32, i32) {
    %c0_i32 = arith.constant 0 : i32
    %c0_i32_0 = arith.constant 0 : i32
    %c0_i32_1 = arith.constant 0 : i32
    %c0_i32_2 = arith.constant 0 : i32
    return %c0_i32, %c0_i32_0, %c0_i32_1 : i32, i32, i32
  }
  func.func @transform_7(%arg0: i32, %arg1: i32) -> (i32, i32) {
    %c0_i32 = arith.constant 0 : i32
    %c0_i32_0 = arith.constant 0 : i32
    %c0_i32_1 = arith.constant 0 : i32
    return %c0_i32, %c0_i32_0 : i32, i32
  }
  func.func @transform_8(%arg0: i32, %arg1: i32) -> (i32, i32, i32, i32) {
    %c0_i32 = arith.constant 0 : i32
    %c0_i32_0 = arith.constant 0 : i32
    %c0_i32_1 = arith.constant 0 : i32
    return %arg0, %arg1, %c0_i32, %c0_i32_0 : i32, i32, i32, i32
  }
}

</mosaic_0001>

<bundles_post_ra>
// kernel: tpu_custom_call.1
= control target key start
LH: loop header
LB: loop body
LE: loop exit
PB: predicated region body
PF: predicated region fallthrough
CT: control target
= control target key end

     0   :  { %13 = vsyncpa [#allocation3], 0  ;;  %s3154_s0 = inlined_call_operand.vmem [shape: f32[2,9,9,4], index: 0, kind: input, shape index: {}]   ;;  %s3155_s1 = inlined_call_operand.vmem [shape: f32[2,9,9,4], index: 1, kind: input, shape index: {}]   ;;  %s3156_s2 = inlined_call_operand.vmem [shape: f32[2,9,9,4], index: 2, kind: input, shape index: {}]   ;;  %s3157_s3 = inlined_call_operand.vmem [shape: f32[2,9,9,4], index: 3, kind: input, shape index: {}]   ;;  %s3158_s4 = inlined_call_operand.vmem [shape: f32[2,9,9,4], index: 4, kind: input, shape index: {}]   ;;  %s3159_s5 = inlined_call_operand.vmem [shape: f32[2,9,9,4], index: 5, kind: input, shape index: {}]   ;;  %s3160_s6 = inlined_call_operand.vmem [shape: f32[9,4,8], index: 6, kind: input, shape index: {}]   ;;  %s3161_s7 = inlined_call_operand.vmem [shape: f32[1,8], index: 7, kind: input, shape index: {}]   ;;  %s3162_s8 = inlined_call_operand.hbm [shape: f32[2,8,8,8], index: 8, kind: output, shape index: {}]  }
   0x1   :  { %15 = vsyncpa [#allocation3 + $0x1], 0  ;;  %s2696_s27 = smov 0   ;;  %s2698_s28 = smov 0  }
   0x2   :  { %s2700_s29 = smov 0   ;;  %s2702_s30 = smov 0  }
   0x3   :  { %s2704_s9 = smov 0   ;;  %s2706_s10 = smov 0  }
   0x4 LB: > { %s2189_s11 = sadd.s32 4294967295, %s2646_s10   ;;  %s2190_s12 = sadd.s32 4294967294, %s2646_s10   ;;  %s2646_s10 = sphi %s2706_s10, %s21_s10   ;;  %s2642_s9 = sphi %s2704_s9, %s3169_s9   ;;  %s2638_s30 = sphi %s2702_s30, %s3168_s30   ;;  %s2634_s29 = sphi %s2700_s29, %s3167_s29   ;;  %s2630_s28 = sphi %s2698_s28, %s3166_s28   ;;  %s2626_s27 = sphi %s2696_s27, %s3165_s27  }
   0x5   : > { %s33_s13 = sadd.s32 1, %s2642_s9  ;;  %s260_s14 = sadd.s32 1, %s2634_s29 }
   0x6   : > { %p35_p0 = scmp.ge.s32.totalorder %s33_s13, 2  ;;  %p270_p1 = scmp.ne.s32.totalorder %s2634_s29, %s2630_s28 }
   0x7   : > { %p271_p2 = scmp.eq.s32.totalorder %s2189_s11, 1  ;;  %p276_p3 = scmp.ne.s32.totalorder %s2630_s28, %s2626_s27 }
   0x8   : > { %s3171_s13 = smov (%p35_p0, %s33_s13), 0  ;;  %p277_p5 = scmp.eq.s32.totalorder %s2190_s12, 1 }
   0x9   : > { %p2736_p4 = por %p271_p2, %p270_p1  ;;  %s255_s16 = ssub.s32 %s2642_s9, %s3171_s13 }
   0xa   : > { %p2193_p6 = scmp.ge.s32.totalorder %s2646_s10, 1  ;;  %p258_p7 = scmp.eq.s32.totalorder %s255_s16, 0 }
   0xb   : > { %p2743_p8 = por %p277_p5, %p276_p3  ;;  %p429_p9 = scmp.lt.s32.totalorder %s2646_s10, 3 }
   0xc   : > { %s2749_s18 = scalar_select %p258_p7, %s2634_s29, %s260_s14  }
   0xd   : > { %p430_p10 = pnand %p2193_p6, %p429_p9 }
   0xe   : > { %p546_p11 = scmp.lt.s32.totalorder (!%p430_p10), %s2638_s30, 1 }
   0xf   : > { %433 = sbr.rel (%p430_p10) target bundleno = 313 (0x139), region = 52 }
  0x14   : > { %v2201_v0 = vld [vmem:[%s3160_s6 + $0x4] sm:$0xf]  ;;  %vm730_vm0 = vcmask 1043456   ;;  %v702_v1 = vld [vmem:[%s3160_s6] sm:$0xf]  ;;  %s547_s25 = scalar_select %p546_p11, %s2638_s30, 1 }
  0x15   : > { %2508 = vmatprep.subr.msk.mxu1 %vm730_vm0, %v2201_v0  ;;  %2382 = vmatprep.subr.msk.mxu0 %vm730_vm0, %v2201_v0  ;;  %v2220_v2 = vld [vmem:[%s3160_s6 + $0x8] sm:$0xf]  ;;  %vm705_vm1 = vcmask 31744   ;;  %v2230_v6 = vld [vmem:[%s3160_s6 + $0xc] sm:$0xf]  ;;  %vm979_vm2 = vcmask 1046528  }
  0x16   : > { %2509 = vmatpush3.msk.msra.mxu1 %vm730_vm0, %v2201_v0  ;;  %2383 = vmatpush3.msk.msra.mxu0 %vm730_vm0, %v2201_v0  ;;  %s2768_s26 = smul.u32 144, %s547_s25  ;;  %v2240_v7 = vld [vmem:[%s3160_s6 + $0x10] sm:$0xf]  ;;  %v2250_v40 = vld [vmem:[%s3160_s6 + $0x14] sm:$0xf]  ;;  %vm1977_vm3 = vcmask 64512  }
  0x17   : > { %2396 = vmatprep.subr.msk.mxu1 %vm730_vm0, %v702_v1  ;;  %2410 = vmatprep.subr.msk.mxu0 %vm730_vm0, %v2220_v2  ;;  %v2260_v41 = vld [vmem:[%s3160_s6 + $0x18] sm:$0xf]  ;;  %v2270_v61 = vld [vmem:[%s3160_s6 + $0x1c] sm:$0xf]  ;;  %v2280_v62 = vld [vmem:[%s3160_s6 + $0x20] sm:$0xf] }
  0x18   : > { %s2774_s14 = scalar_lea.vmem %s3154_s0, %s2768_s26  ;;  %s588_s20 = scalar_lea.vmem %s3156_s2, %s2768_s26 }
  0x19   : > { %v667_v3 = vld [vmem:[%s588_s20] sm:$0xff]  ;;  %v2782_v5 = vld [vmem:[%s588_s20 + $0x10] sm:$0xff]  ;;  %v652_v15 = vld [vmem:[%s2774_s14 + $0x8] sm:$0x1]  ;;  %s2913_s23 = scalar_lea.vmem %s3159_s5, %s2768_s26  ;;  %s2297_s16 = sadd.s32 128, %s2768_s26 }
  0x1a   : > { %v2780_v4 = vld [vmem:[%s588_s20 + $0x40] sm:$0xff]  ;;  %2384 = vmatprep.mubr.msk.f32.mxu0 %vm705_vm1, %v667_v3  ;;  %v2793_v8 = vld [vmem:[%s588_s20 + $0x50] sm:$0xff]  ;;  %v654_v17 = vld [vmem:[%s2774_s14 + $0x18] sm:$0x1]  ;;  %v981_v18 = vrot.slane %v652_v15, 1 }
  0x1b   : > { %2390 = vmatprep.mubr.msk.f32.mxu1 %vm705_vm1, %v2780_v4  ;;  %v2795_v9 = vld [vmem:[%s588_s20 + $0x20] sm:$0xff]  ;;  %2385 = vmatmul.mubr.msk.f32.vlgmr.msra.gmra.mxu0 %vm705_vm1, %v2782_v5  ;;  %v2803_v11 = vld [vmem:[%s588_s20 + $0x30] sm:$0xff]  ;;  %v984_v20 = vrot.slane %v654_v17, 1  ;;  %v656_v22 = vld [vmem:[%s2774_s14 + $0x28] sm:$0x1] }
  0x1c   : > { %v2797_v10 = vld [vmem:[%s588_s20 + $0x60] sm:$0xff]  ;;  %2391 = vmatmul.mubr.msk.f32.vlgmr.msra.gmra.mxu1 %vm705_vm1, %v2793_v8  ;;  %v2805_v12 = vld [vmem:[%s588_s20 + $0x70] sm:$0xff]  ;;  %2411 = vmatpush3.msk.msra.mxu0 %vm730_vm0, %v2220_v2  ;;  %v987_v24 = vrot.slane %v656_v22, 1  ;;  %v658_v26 = vld [vmem:[%s2774_s14 + $0x38] sm:$0x1]  ;;  %s2907_s20 = scalar_lea.vmem %s3158_s4, %s2768_s26  ;;  %s537_s26 = sand.u32 1, %s2630_s28  }
  0x1d   : > { %v651_v13 = vld [vmem:[%s2774_s14] sm:$0xff]  ;;  %2397 = vmatpush3.msk.msra.mxu1 %vm730_vm0, %v702_v1  ;;  %v2812_v16 = vld [vmem:[%s2774_s14 + $0x10] sm:$0xff]  ;;  %2387 = vmatprep.mubr.msk.f32.mxu0 %vm705_vm1, %v2795_v9  ;;  %v660_v29 = vld [vmem:[%s2774_s14 + $0x48] sm:$0x1]  ;;  %v990_v32 = vrot.slane %v658_v26, 1  ;;  %s2194_s11 = sshll.u32 %s537_s26, 6 }
  0x1e   : > { %v980_v14 = vrot.slane %v651_v13, 1  ;;  %2393 = vmatprep.mubr.msk.f32.mxu1 %vm705_vm1, %v2797_v10  ;;  %v983_v19 = vrot.slane %v2812_v16, 1  ;;  %v2821_v21 = vld [vmem:[%s2774_s14 + $0x20] sm:$0xff]  ;;  %2424 = vmatprep.subr.msk.mxu1 %vm730_vm0, %v2230_v6  ;;  %v2828_v25 = vld [vmem:[%s2774_s14 + $0x30] sm:$0xff]  ;;  %v993_v34 = vrot.slane %v660_v29, 1  ;;  %s3074_s12 = scalar_lea.vmem [#allocation2], %s2194_s11 }
  0x1f   : > { %2438 = vmatprep.subr.msk.mxu0 %vm730_vm0, %v2240_v7  ;;  %v986_v23 = vrot.slane %v2821_v21, 1  ;;  %v2832_v27 = vld [vmem:[%s2774_s14 + $0x40] sm:$0xff]  ;;  %2388 = vmatmul.mubr.msk.f32.gmra.mxu0 %vm705_vm1, %v2803_v11  ;;  %v989_v31 = vrot.slane %v2828_v25, 1  ;;  %v2848_v35 = vld [vmem:[%s2774_s14 + $0x50] sm:$0xff]  ;;  %v662_v36 = vld [vmem:[%s2774_s14 + $0x58] sm:$0x1] }
  0x20   : > { %2394 = vmatmul.mubr.msk.f32.gmra.mxu1 %vm705_vm1, %v2805_v12  ;;  %v982_v28 = vsel %vm979_vm2, %v980_v14, %v981_v18  ;;  %v2843_v30 = vsel %vm979_vm2, %v983_v19, %v984_v20  ;;  %v992_v33 = vrot.slane %v2832_v27, 1  ;;  %v2855_v38 = vld [vmem:[%s2774_s14 + $0x60] sm:$0xff]  ;;  %v664_v39 = vld [vmem:[%s2774_s14 + $0x68] sm:$0x1]  ;;  %v995_v43 = vrot.slane %v2848_v35, 1  ;;  %v2883_v48 = vld [vmem:[%s2774_s14 + $0x70] sm:$0xff] }
  0x21   : > { %2398 = vmatprep.mubr.msk.f32.mxu1 %vm705_vm1, %v651_v13  ;;  %2412 = vmatprep.mubr.msk.f32.mxu0 %vm705_vm1, %v982_v28  ;;  %v2852_v37 = vsel %vm979_vm2, %v986_v23, %v987_v24  ;;  %v2871_v42 = vsel %vm979_vm2, %v989_v31, %v990_v32  ;;  %v996_v44 = vrot.slane %v662_v36, 1  ;;  %v998_v46 = vrot.slane %v2855_v38, 1  ;;  %v666_v49 = vld [vmem:[%s2774_s14 + $0x78] sm:$0x1]  ;;  %v678_v55 = vld [vmem:[%s2907_s20] sm:$0xff]  ;;  %v680_v57 = vld [vmem:[%s2907_s20 + $0x10] sm:$0xff] }
  0x22   : > { %v2879_v45 = vsel %vm979_vm2, %v992_v33, %v993_v34  ;;  %v999_v47 = vrot.slane %v664_v39, 1  ;;  %v1001_v51 = vrot.slane %v2883_v48, 1  ;;  %v1002_v52 = vrot.slane %v666_v49, 1  ;;  %v694_v56 = vld [vmem:[%s2913_s23] sm:$0xff]  ;;  %v695_v58 = vld [vmem:[%s2913_s23 + $0x10] sm:$0xff]  ;;  %s2002_s14 = sshll.u32 %s3074_s12, 4  ;;  %s3101_s14 = int_to_ptr.vmem [resolvable:$true] %s2002_s14 }
  0x23   : > { %2413 = vmatmul.mubr.msk.f32.vlgmr.msra.gmra.mxu0 %vm705_vm1, %v2843_v30  ;;  %v2897_v50 = vsel %vm979_vm2, %v995_v43, %v996_v44  ;;  %v682_v59 = vld [vmem:[%s2907_s20 + $0x20] sm:$0xff]  ;;  %v684_v63 = vld [vmem:[%s2907_s20 + $0x30] sm:$0xff]  ;;  %v679_v3 = vld [vmem:[%s2907_s20 + $0x8] sm:$0x1]  ;;  %v1430_v13 = vrot.slane %v678_v55, 1  ;;  %v1433_v20 = vrot.slane %v680_v57, 1 }
  0x24   : > { %2399 = vmatmul.mubr.msk.f32.vlgmr.msra.gmra.mxu1 %vm705_vm1, %v2812_v16  ;;  %2439 = vmatpush3.msk.msra.mxu0 %vm730_vm0, %v2240_v7  ;;  %v2901_v53 = vsel %vm979_vm2, %v998_v46, %v999_v47  ;;  %v2924_v54 = vsel %vm979_vm2, %v1001_v51, %v1002_v52  ;;  %v696_v60 = vld [vmem:[%s2913_s23 + $0x20] sm:$0xff]  ;;  %v697_v0 = vld [vmem:[%s2913_s23 + $0x30] sm:$0xff]  ;;  %v1431_v17 = vrot.slane %v679_v3, 1  ;;  %v681_v18 = vld [vmem:[%s2907_s20 + $0x18] sm:$0x1]  ;;  %v1436_v29 = vrot.slane %v682_v59, 1 }
  0x25   : > { %2425 = vmatpush3.msk.msra.mxu1 %vm730_vm0, %v2230_v6  ;;  %2401 = vmatprep.mubr.msk.f32.mxu1 %vm705_vm1, %v2821_v21  ;;  %v686_v1 = vld [vmem:[%s2907_s20 + $0x40] sm:$0xff]  ;;  %v688_v6 = vld [vmem:[%s2907_s20 + $0x50] sm:$0xff]  ;;  %v683_v19 = vld [vmem:[%s2907_s20 + $0x28] sm:$0x1]  ;;  %v1434_v24 = vrot.slane %v681_v18, 1  ;;  %v1439_v33 = vrot.slane %v684_v63, 1 }
  0x26   : > { %2415 = vmatprep.mubr.msk.f32.mxu0 %vm705_vm1, %v2852_v37  ;;  %2452 = vmatprep.subr.msk.mxu1 %vm730_vm0, %v2250_v40  ;;  %v698_v2 = vld [vmem:[%s2913_s23 + $0x40] sm:$0xff]  ;;  %v699_v7 = vld [vmem:[%s2913_s23 + $0x50] sm:$0xff]  ;;  %v1432_v26 = vsel %vm979_vm2, %v1430_v13, %v1431_v17  ;;  %v685_v28 = vld [vmem:[%s2907_s20 + $0x38] sm:$0x1]  ;;  %v1437_v31 = vrot.slane %v683_v19, 1  ;;  %v1442_v39 = vrot.slane %v686_v1, 1 }
  0x27   : > { %2466 = vmatprep.subr.msk.mxu0 %vm730_vm0, %v2260_v41  ;;  %2416 = vmatmul.mubr.msk.f32.gmra.mxu0 %vm705_vm1, %v2871_v42  ;;  %v690_v14 = vld [vmem:[%s2907_s20 + $0x60] sm:$0xff]  ;;  %v692_v22 = vld [vmem:[%s2907_s20 + $0x70] sm:$0xff]  ;;  %v687_v32 = vld [vmem:[%s2907_s20 + $0x48] sm:$0x1]  ;;  %v1435_v34 = vsel %vm979_vm2, %v1433_v20, %v1434_v24  ;;  %v1440_v36 = vrot.slane %v685_v28, 1  ;;  %v1445_v46 = vrot.slane %v688_v6, 1 }
  0x28   : > { %2402 = vmatmul.mubr.msk.f32.gmra.mxu1 %vm705_vm1, %v2828_v25  ;;  %2418 = vmatprep.mubr.msk.f32.mxu0 %vm705_vm1, %v2879_v45  ;;  %v700_v15 = vld [vmem:[%s2913_s23 + $0x60] sm:$0xff]  ;;  %v701_v23 = vld [vmem:[%s2913_s23 + $0x70] sm:$0xff]  ;;  %v1438_v43 = vsel %vm979_vm2, %v1436_v29, %v1437_v31  ;;  %v691_v44 = vld [vmem:[%s2907_s20 + $0x68] sm:$0x1]  ;;  %v1448_v49 = vrot.slane %v690_v14, 1  ;;  %s605_s23 = scalar_lea.vmem %s3157_s3, %s2297_s16  ;;  %s2570_s22 = scalar_lea.vmem %s3101_s14, 1024 }
  0x29   : > { %2404 = vmatprep.mubr.msk.f32.mxu1 %vm705_vm1, %v2832_v27  ;;  %v1449_v52 = vrot.slane %v691_v44, 1  ;;  %p2571_p12 = scmp.ne.s32.totalorder %s3101_s14, %s2570_s22 }
  0x2b   : > { %2419 = vmatmul.mubr.msk.f32.gmra.mxu0 %vm705_vm1, %v2897_v50  ;;  %p2572_p13 = pnand %p2571_p12, %p2736_p4 }
  0x2c   : > { %2405 = vmatmul.mubr.msk.f32.gmra.mxu1 %vm705_vm1, %v2848_v35  ;;  %2421 = vmatprep.mubr.msk.f32.mxu0 %vm705_vm1, %v2901_v53 }
  0x2d   : > { %2407 = vmatprep.mubr.msk.f32.mxu1 %vm705_vm1, %v2855_v38  ;;  %p2573_p0 = pneg %p2572_p13 }
  0x2f   : > { %2422 = vmatmul.mubr.msk.f32.gmra.mxu0 %vm705_vm1, %v2924_v54 }
  0x30   : > { %2408 = vmatmul.mubr.msk.f32.gmra.mxu1 %vm705_vm1, %v2883_v48  ;;  %2440 = vmatprep.mubr.msk.f32.mxu0 %vm705_vm1, %v694_v56 }
  0x31   : > { %2426 = vmatprep.mubr.msk.f32.mxu1 %vm705_vm1, %v678_v55  ;;  %v693_v55 = vld [vmem:[%s2907_s20 + $0x78] sm:$0x1] }
  0x33   : > { %2441 = vmatmul.mubr.msk.f32.vlgmr.msra.gmra.mxu0 %vm705_vm1, %v695_v58 }
  0x34   : > { %2427 = vmatmul.mubr.msk.f32.vlgmr.msra.gmra.mxu1 %vm705_vm1, %v680_v57  ;;  %2467 = vmatpush3.msk.msra.mxu0 %vm730_vm0, %v2260_v41  ;;  %v689_v41 = vld [vmem:[%s2907_s20 + $0x58] sm:$0x1]  ;;  %v1452_v57 = vrot.slane %v693_v55, 1  ;;  %s571_s20 = scalar_lea.vmem %s3155_s1, %s2297_s16  ;;  %s2300_s16 = sshll.u32 %s2638_s30, 10 }
  0x35   : > { %2453 = vmatpush3.msk.msra.mxu1 %vm730_vm0, %v2250_v40  ;;  %2429 = vmatprep.mubr.msk.f32.mxu1 %vm705_vm1, %v682_v59  ;;  %v1443_v40 = vrot.slane %v687_v32, 1  ;;  %v1446_v47 = vrot.slane %v689_v41, 1  ;;  %s3099_s21 = scalar_lea.hbm %s3162_s8, %s2300_s16  ;;  %s3109_s30 = scalar_lea.sflag [#allocation3], %s537_s26 }
  0x36   : > { %2443 = vmatprep.mubr.msk.f32.mxu0 %vm705_vm1, %v696_v60  ;;  %2480 = vmatprep.subr.msk.mxu1 %vm730_vm0, %v2270_v61 }
  0x37   : > { %2494 = vmatprep.subr.msk.mxu0 %vm730_vm0, %v2280_v62  ;;  %2444 = vmatmul.mubr.msk.f32.gmra.mxu0 %vm705_vm1, %v697_v0  ;;  %v1444_v51 = vsel %vm979_vm2, %v1442_v39, %v1443_v40  ;;  %v1447_v56 = vsel %vm979_vm2, %v1445_v46, %v1446_v47 }
  0x38   : > { %2430 = vmatmul.mubr.msk.f32.gmra.mxu1 %vm705_vm1, %v684_v63  ;;  %2446 = vmatprep.mubr.msk.f32.mxu0 %vm705_vm1, %v698_v2 }
  0x39   : > { %2432 = vmatprep.mubr.msk.f32.mxu1 %vm705_vm1, %v686_v1 }
  0x3b   : > { %2447 = vmatmul.mubr.msk.f32.gmra.mxu0 %vm705_vm1, %v699_v7 }
  0x3c   : > { %2433 = vmatmul.mubr.msk.f32.gmra.mxu1 %vm705_vm1, %v688_v6  ;;  %2449 = vmatprep.mubr.msk.f32.mxu0 %vm705_vm1, %v700_v15 }
  0x3d   : > { %2435 = vmatprep.mubr.msk.f32.mxu1 %vm705_vm1, %v690_v14 }
  0x3f   : > { %2450 = vmatmul.mubr.msk.f32.gmra.mxu0 %vm705_vm1, %v701_v23 }
  0x40   : > { %2436 = vmatmul.mubr.msk.f32.gmra.mxu1 %vm705_vm1, %v692_v22  ;;  %2468 = vmatprep.mubr.msk.f32.mxu0 %vm705_vm1, %v2812_v16  ;;  %v1441_v16 = vsel %vm979_vm2, %v1439_v33, %v1440_v36 }
  0x41   : > { %2454 = vmatprep.mubr.msk.f32.mxu1 %vm705_vm1, %v1432_v26 }
  0x43   : > { %2469 = vmatmul.mubr.msk.f32.vlgmr.msra.gmra.mxu0 %vm705_vm1, %v2821_v21  ;;  %v1451_v21 = vrot.slane %v692_v22, 1 }
  0x44   : > { %2455 = vmatmul.mubr.msk.f32.vlgmr.msra.gmra.mxu1 %vm705_vm1, %v1435_v34  ;;  %2495 = vmatpush3.msk.msra.mxu0 %vm730_vm0, %v2280_v62 }
  0x45   : > { %2481 = vmatpush3.msk.msra.mxu1 %vm730_vm0, %v2270_v61  ;;  %2457 = vmatprep.mubr.msk.f32.mxu1 %vm705_vm1, %v1438_v43 }
  0x46   : > { %2471 = vmatprep.mubr.msk.f32.mxu0 %vm705_vm1, %v2828_v25  ;;  %v1450_v25 = vsel %vm979_vm2, %v1448_v49, %v1449_v52 }
  0x47   : > { %2472 = vmatmul.mubr.msk.f32.gmra.mxu0 %vm705_vm1, %v2832_v27  ;;  %v1453_v27 = vsel %vm979_vm2, %v1451_v21, %v1452_v57 }
  0x48   : > { %2458 = vmatmul.mubr.msk.f32.gmra.mxu1 %vm705_vm1, %v1441_v16  ;;  %2474 = vmatprep.mubr.msk.f32.mxu0 %vm705_vm1, %v2848_v35  ;;  %v675_v35 = vld [vmem:[%s571_s20] sm:$0xff] }
  0x49   : > { %2460 = vmatprep.mubr.msk.f32.mxu1 %vm705_vm1, %v1444_v51 }
  0x4b   : > { %2475 = vmatmul.mubr.msk.f32.gmra.mxu0 %vm705_vm1, %v2855_v38  ;;  %v676_v38 = vld [vmem:[%s571_s20 + $0x8] sm:$0x1] }
  0x4c   : > { %2461 = vmatmul.mubr.msk.f32.gmra.mxu1 %vm705_vm1, %v1447_v56  ;;  %2477 = vmatprep.mubr.msk.f32.mxu0 %vm705_vm1, %v2883_v48 }
  0x4d   : > { %2463 = vmatprep.mubr.msk.f32.mxu1 %vm705_vm1, %v1450_v25 }
  0x4f   : > { %2478 = vmatmul.mubr.msk.f32.gmra.mxu0 %vm705_vm1, %v675_v35 }
  0x50   : > { %2464 = vmatmul.mubr.msk.f32.gmra.mxu1 %vm705_vm1, %v1453_v27  ;;  %2496 = vmatprep.mubr.msk.f32.mxu0 %vm705_vm1, %v2843_v30  ;;  %v1832_v30 = vrot.slane %v676_v38, 1 }
  0x51   : > { %2482 = vmatprep.mubr.msk.f32.mxu1 %vm705_vm1, %v2782_v5  ;;  %v1831_v5 = vrot.slane %v675_v35, 1 }
  0x53   : > { %2497 = vmatmul.mubr.msk.f32.vlgmr.msra.gmra.mxu0 %vm705_vm1, %v2852_v37 }
  0x54   : > { %2483 = vmatmul.mubr.msk.f32.vlgmr.msra.gmra.mxu1 %vm705_vm1, %v2795_v9  ;;  %2499 = vmatprep.mubr.msk.f32.mxu0 %vm705_vm1, %v2871_v42 }
  0x55   : > { %2485 = vmatprep.mubr.msk.f32.mxu1 %vm705_vm1, %v2803_v11 }
  0x57   : > { %2500 = vmatmul.mubr.msk.f32.gmra.mxu0 %vm705_vm1, %v2879_v45 }
  0x58   : > { %2486 = vmatmul.mubr.msk.f32.gmra.mxu1 %vm705_vm1, %v2780_v4  ;;  %2502 = vmatprep.mubr.msk.f32.mxu0 %vm705_vm1, %v2897_v50  ;;  %v677_v4 = vld [vmem:[%s605_s23] sm:$0xff]  ;;  %s2648_s23 = smov [#allocation2]  }
  0x59   : > { %2488 = vmatprep.mubr.msk.f32.mxu1 %vm705_vm1, %v2793_v8  ;;  %v1833_v8 = vsel %vm979_vm2, %v1831_v5, %v1832_v30  ;;  %s2574_s24 = sshll.u32 %s2648_s23, 4  ;;  %s2575_s24 = int_to_ptr.vmem [resolvable:$false] %s2574_s24 }
  0x5a   : > { %s2576_s25 = scalar_lea.vmem %s2575_s24, 2048  ;;  %p2577_p1 = scmp.lt.s32.totalorder %s3101_s14, %s2575_s24 }
  0x5b   : > { %2503 = vmatmul.mubr.msk.f32.gmra.mxu0 %vm705_vm1, %v2901_v53  ;;  %p2578_p2 = scmp.lt.s32.totalorder %s2576_s25, %s2570_s22 }
  0x5c   : > { %2489 = vmatmul.mubr.msk.f32.gmra.mxu1 %vm705_vm1, %v2797_v10  ;;  %2505 = vmatprep.mubr.msk.f32.mxu0 %vm705_vm1, %v2924_v54 }
  0x5d   : > { %2491 = vmatprep.mubr.msk.f32.mxu1 %vm705_vm1, %v2805_v12  ;;  %p2579_p3 = por %p2578_p2, %p2577_p1 }
  0x5f   : > { %2506 = vmatmul.mubr.msk.f32.gmra.mxu0 %vm705_vm1, %v1833_v8  ;;  %p2580_p5 = pnand %p2579_p3, %p2573_p0 }
  0x60   : > { %2492 = vmatmul.mubr.msk.f32.gmra.mxu1 %vm705_vm1, %v677_v4 }
  0xdb   : > { %v2386_v9 = vpop.f32.mrf.mxu0 }
  0xdc   : > { %v2392_v11 = vpop.f32.mrf.mxu1 }
  0xdd   : > { %v800_v37 = vpop.f32.mrf.mxu0 }
  0xde   : > { %v820_v10 = vpop.f32.mrf.mxu1 }
  0xdf   : > { %v2389_v42 = vpop.f32.mrf.mxu0 }
  0xe0   : > { %v2395_v45 = vpop.f32.mrf.mxu1 }
  0xe1   : > { %v810_v48 = vpop.f32.mrf.mxu0 }
  0xe2   : > { %v3055_v50 = vpop.f32.mrf.mxu1 }
  0xe3   : > { %v2414_v53 = vpop.f32.mrf.mxu0 }
  0xe4   : > { %v2400_v12 = vpop.f32.mrf.mxu1 }
  0xe5   : > { %v1091_v54 = vpop.f32.mrf.mxu0  ;;  %v938_v36 = vadd.f32 %v2400_v12, %v2386_v9 }
  0xe6   : > { %v932_v58 = vpop.f32.mrf.mxu1 }
  0xe7   : > { %v2417_v60 = vpop.f32.mrf.mxu0  ;;  %v933_v41 = vadd.f32 %v932_v58, %v800_v37  ;;  %v1131_v46 = vadd.f32 %v2414_v53, %v938_v36 }
  0xe8   : > { %v2403_v59 = vpop.f32.mrf.mxu1 }
  0xe9   : > { %v1101_v62 = vpop.f32.mrf.mxu0  ;;  %v948_v16 = vadd.f32 %v2403_v59, %v2389_v42  ;;  %v1130_v51 = vadd.f32 %v1091_v54, %v933_v41 }
  0xea   : > { %v942_v61 = vpop.f32.mrf.mxu1 }
  0xeb   : > { %v2420_v0 = vpop.f32.mrf.mxu0  ;;  %v943_v52 = vadd.f32 %v942_v61, %v810_v48  ;;  %v1133_v25 = vadd.f32 %v2417_v60, %v948_v16 }
  0xec   : > { %v2406_v63 = vpop.f32.mrf.mxu1 }
  0xed   : > { %v1111_v2 = vpop.f32.mrf.mxu0  ;;  %v958_v21 = vadd.f32 %v2406_v63, %v2392_v11  ;;  %v1132_v30 = vadd.f32 %v1101_v62, %v943_v52 }
  0xee   : > { %v952_v1 = vpop.f32.mrf.mxu1 }
  0xef   : > { %v2423_v6 = vpop.f32.mrf.mxu0  ;;  %v953_v35 = vadd.f32 %v952_v1, %v820_v10  ;;  %v1135_v9 = vadd.f32 %v2420_v0, %v958_v21 }
  0xf0   : > { %v2409_v3 = vpop.f32.mrf.mxu1 }
  0xf1   : > { %v1121_v13 = vpop.f32.mrf.mxu0  ;;  %v968_v37 = vadd.f32 %v2409_v3, %v2395_v45  ;;  %v1134_v48 = vadd.f32 %v1111_v2, %v953_v35 }
  0xf2   : > { %v962_v7 = vpop.f32.mrf.mxu1 }
  0xf3   : > { %v2442_v15 = vpop.f32.mrf.mxu0  ;;  %v963_v11 = vadd.f32 %v962_v7, %v3055_v50  ;;  %v1137_v1 = vadd.f32 %v2423_v6, %v968_v37  ;;  %v3066_v6 = vld [vmem:[%s3161_s7] ss:$0 sm:$0xff] }
  0xf4   : > { %v2428_v14 = vpop.f32.mrf.mxu1 }
  0xf5   : > { %v1375_v18 = vpop.f32.mrf.mxu0  ;;  %v1273_v55 = vadd.f32 %v2428_v14, %v1131_v46 }
  0xf6   : > { %v1233_v17 = vpop.f32.mrf.mxu1 }
  0xf7   : > { %v2445_v20 = vpop.f32.mrf.mxu0  ;;  %v1272_v27 = vadd.f32 %v1233_v17, %v1130_v51  ;;  %v1415_v4 = vadd.f32 %v2442_v15, %v1273_v55  ;;  %v1136_v17 = vadd.f32 %v1121_v13, %v963_v11 }
  0xf8   : > { %v2431_v19 = vpop.f32.mrf.mxu1 }
  0xf9   : > { %v1385_v23 = vpop.f32.mrf.mxu0  ;;  %v1275_v8 = vadd.f32 %v2431_v19, %v1133_v25  ;;  %v1414_v53 = vadd.f32 %v1375_v18, %v1272_v27 }
  0xfa   : > { %v1243_v22 = vpop.f32.mrf.mxu1 }
  0xfb   : > { %v2448_v26 = vpop.f32.mrf.mxu0  ;;  %v1274_v58 = vadd.f32 %v1243_v22, %v1132_v30  ;;  %v1417_v10 = vadd.f32 %v2445_v20, %v1275_v8 }
  0xfc   : > { %v2434_v24 = vpop.f32.mrf.mxu1 }
  0xfd   : > { %v1395_v29 = vpop.f32.mrf.mxu0  ;;  %v1277_v59 = vadd.f32 %v2434_v24, %v1135_v9  ;;  %v1416_v0 = vadd.f32 %v1385_v23, %v1274_v58 }
  0xfe   : > { %v1253_v28 = vpop.f32.mrf.mxu1 }
  0xff   : > { %v3057_v32 = vpop.f32.mrf.mxu0  ;;  %v1276_v62 = vadd.f32 %v1253_v28, %v1134_v48  ;;  %v1419_v18 = vadd.f32 %v2448_v26, %v1277_v59 }
 0x100   : > { %v2437_v31 = vpop.f32.mrf.mxu1 }
 0x101   : > { %v3059_v34 = vpop.f32.mrf.mxu0  ;;  %v1279_v19 = vadd.f32 %v2437_v31, %v1137_v1  ;;  %v1418_v36 = vadd.f32 %v1395_v29, %v1276_v62 }
 0x102   : > { %v1263_v33 = vpop.f32.mrf.mxu1 }
 0x103   : > { %v2470_v40 = vpop.f32.mrf.mxu0  ;;  %v1278_v20 = vadd.f32 %v1263_v33, %v1136_v17 }
 0x104   : > { %v2456_v39 = vpop.f32.mrf.mxu1 }
 0x105   : > { %v1662_v44 = vpop.f32.mrf.mxu0  ;;  %v1581_v54 = vadd.f32 %v2456_v39, %v1415_v4 }
 0x106   : > { %v1541_v43 = vpop.f32.mrf.mxu1 }
 0x107   : > { %v2473_v49 = vpop.f32.mrf.mxu0  ;;  %v1580_v63 = vadd.f32 %v1541_v43, %v1414_v53  ;;  %v1702_v45 = vadd.f32 %v2470_v40, %v1581_v54  ;;  %v1421_v40 = vadd.f32 %v3057_v32, %v1279_v19 }
 0x108   : > { %v2459_v47 = vpop.f32.mrf.mxu1 }
 0x109   : > { %v1672_v57 = vpop.f32.mrf.mxu0  ;;  %v1583_v3 = vadd.f32 %v2459_v47, %v1417_v10  ;;  %v1701_v7 = vadd.f32 %v1662_v44, %v1580_v63  ;;  %v1420_v47 = vadd.f32 %v3059_v34, %v1278_v20 }
 0x10a   : > { %v1551_v56 = vpop.f32.mrf.mxu1 }
 0x10b   : > { %v2476_v5 = vpop.f32.mrf.mxu0  ;;  %v1582_v22 = vadd.f32 %v1551_v56, %v1416_v0  ;;  %v1704_v13 = vadd.f32 %v2473_v49, %v1583_v3 }
 0x10c   : > { %v2462_v38 = vpop.f32.mrf.mxu1 }
 0x10d   : > { %v1682_v42 = vpop.f32.mrf.mxu0  ;;  %v1585_v39 = vadd.f32 %v2462_v38, %v1419_v18  ;;  %v1703_v29 = vadd.f32 %v1672_v57, %v1582_v22 }
 0x10e   : > { %v1561_v12 = vpop.f32.mrf.mxu1 }
 0x10f   : > { %v2479_v61 = vpop.f32.mrf.mxu0  ;;  %v1584_v41 = vadd.f32 %v1561_v12, %v1418_v36  ;;  %v1706_v51 = vadd.f32 %v2476_v5, %v1585_v39 }
 0x110   : > { %v2465_v60 = vpop.f32.mrf.mxu1 }
 0x111   : > { %v1692_v15 = vpop.f32.mrf.mxu0  ;;  %v1587_v52 = vadd.f32 %v2465_v60, %v1421_v40  ;;  %v1705_v27 = vadd.f32 %v1682_v42, %v1584_v41 }
 0x112   : > { %v1571_v14 = vpop.f32.mrf.mxu1 }
 0x113   : > { %v2498_v50 = vpop.f32.mrf.mxu0  ;;  %v1586_v35 = vadd.f32 %v1571_v14, %v1420_v47  ;;  %v1708_v8 = vadd.f32 %v2479_v61, %v1587_v52 }
 0x114   : > { %v2484_v2 = vpop.f32.mrf.mxu1 }
 0x115   : > { %v1823_v24 = vadd.f32 %v2484_v2, %v1702_v45  ;;  %v1907_v28 = vpop.f32.mrf.mxu0  ;;  %v1707_v54 = vadd.f32 %v1692_v15, %v1586_v35 }
 0x116   : > { %v1783_v23 = vpop.f32.mrf.mxu1 }
 0x117   : > { %v1947_v26 = vadd.f32 %v2498_v50, %v1823_v24  ;;  %v1822_v31 = vadd.f32 %v1783_v23, %v1701_v7  ;;  %v2501_v44 = vpop.f32.mrf.mxu0 }
 0x118   : > { %v2487_v43 = vpop.f32.mrf.mxu1 }
 0x119   : > { %v1962_v33 = vadd.f32 %v3066_v6, %v1947_v26  ;;  %v1946_v46 = vadd.f32 %v1907_v28, %v1822_v31  ;;  %v1825_v16 = vadd.f32 %v2487_v43, %v1704_v13  ;;  %v1917_v55 = vpop.f32.mrf.mxu0 }
 0x11a   : > { %v1793_v49 = vpop.f32.mrf.mxu1 }
 0x11b   : > { %v1970_v21 = vmax.f32 %v1962_v33, 0.0  ;;  %v1961_v56 = vadd.f32 %v3066_v6, %v1946_v46  ;;  %v1949_v25 = vadd.f32 %v2501_v44, %v1825_v16  ;;  %v1824_v32 = vadd.f32 %v1793_v49, %v1703_v29  ;;  %v2504_v57 = vpop.f32.mrf.mxu0 }
 0x11c   : > { %v2490_v38 = vpop.f32.mrf.mxu1 }
 0x11d   : > { %1979 = vst.msk [vmem:[%s3074_s12 + $0x8] sm:$0xff] %vm1977_vm3, %v1970_v21  ;;  %v1969_v34 = vmax.f32 %v1961_v56, 0.0  ;;  %v1964_v5 = vadd.f32 %v3066_v6, %v1949_v25  ;;  %v1948_v30 = vadd.f32 %v1917_v55, %v1824_v32  ;;  %v1827_v4 = vadd.f32 %v2490_v38, %v1706_v51  ;;  %v1927_v37 = vpop.f32.mrf.mxu0 }
 0x11e   : > { %v1803_v9 = vpop.f32.mrf.mxu1 }
 0x11f   : > { %1978 = vst.msk [vmem:[%s3074_s12] sm:$0xff] %vm1977_vm3, %v1969_v34  ;;  %v1972_v12 = vmax.f32 %v1964_v5, 0.0  ;;  %v1963_v42 = vadd.f32 %v3066_v6, %v1948_v30  ;;  %v1951_v53 = vadd.f32 %v2504_v57, %v1827_v4  ;;  %v1826_v58 = vadd.f32 %v1803_v9, %v1705_v27  ;;  %v2507_v11 = vpop.f32.mrf.mxu0 }
 0x120   : > { %v2493_v48 = vpop.f32.mrf.mxu1 }
 0x121   : > { %1981 = vst.msk [vmem:[%s3074_s12 + $0x18] sm:$0xff] %vm1977_vm3, %v1972_v12  ;;  %v1971_v59 = vmax.f32 %v1963_v42, 0.0  ;;  %v1966_v60 = vadd.f32 %v3066_v6, %v1951_v53  ;;  %v1950_v61 = vadd.f32 %v1927_v37, %v1826_v58  ;;  %v1829_v10 = vadd.f32 %v2493_v48, %v1708_v8  ;;  %v1937_v0 = vpop.f32.mrf.mxu0 }
 0x122   : > { %v1813_v63 = vpop.f32.mrf.mxu1 }
 0x123   : > { %1980 = vst.msk [vmem:[%s3074_s12 + $0x10] sm:$0xff] %vm1977_vm3, %v1971_v59  ;;  %v1974_v1 = vmax.f32 %v1966_v60, 0.0  ;;  %v1965_v62 = vadd.f32 %v3066_v6, %v1950_v61  ;;  %v1953_v14 = vadd.f32 %v2507_v11, %v1829_v10  ;;  %v1828_v15 = vadd.f32 %v1813_v63, %v1707_v54 }
 0x125   : > { %1983 = vst.msk [vmem:[%s3074_s12 + $0x28] sm:$0xff] %vm1977_vm3, %v1974_v1  ;;  %v1973_v45 = vmax.f32 %v1965_v62, 0.0  ;;  %v1968_v3 = vadd.f32 %v3066_v6, %v1953_v14  ;;  %v1952_v17 = vadd.f32 %v1937_v0, %v1828_v15 }
 0x127   : > { %1982 = vst.msk [vmem:[%s3074_s12 + $0x20] sm:$0xff] %vm1977_vm3, %v1973_v45  ;;  %v1976_v18 = vmax.f32 %v1968_v3, 0.0  ;;  %v1967_v19 = vadd.f32 %v3066_v6, %v1952_v17 }
 0x129   : > { %1985 = vst.msk [vmem:[%s3074_s12 + $0x38] sm:$0xff] %vm1977_vm3, %v1976_v18  ;;  %v1975_v2 = vmax.f32 %v1967_v19, 0.0 }
 0x12b   : > { %1984 = vst.msk [vmem:[%s3074_s12 + $0x30] sm:$0xff] %vm1977_vm3, %v1975_v2 }
 0x12c   : > { %2583 = shalt.err (!%p2580_p5)
}
 0x12d   : > { %s2584_s26 = scalar_lea.hbm %s3099_s21, 1024  ;;  %s2588_s16 = scalar_lea.hbm %s3162_s8, 2048 }
 0x12e   : > { %p2585_p6 = scmp.ne.s32.totalorder %s3099_s21, %s2584_s26  ;;  %p2589_p10 = scmp.lt.s32.totalorder %s3099_s21, %s3162_s8 }
 0x12f   : > { %p2590_p11 = scmp.lt.s32.totalorder %s2588_s16, %s2584_s26 }
 0x130   : > { %p2586_p7 = pnand %p2585_p6, %p2736_p4 }
 0x131   : > { %p2591_p12 = por %p2590_p11, %p2589_p10 }
 0x132   : > { %p2587_p9 = pneg %p2586_p7 }
 0x134   : > { %p2592_p13 = pnand %p2591_p12, %p2587_p9 }
 0x136   : > { %2595 = shalt.err (!%p2592_p13)
}
 0x137   : > { %s2649_s22 = smov 128   ;;  %s2650_s23 = smov 8  }
 0x138   : > { %2512 = dma.vmem_to_hbm [thread:$0]  (%p2736_p4), %s3101_s14, 1024, %s3099_s21, %s3109_s30, %s2649_s22, %s2649_s22, %s2650_s23  }
 0x139 PF: > { %p2519_p0 = scmp.ge.s32.totalorder %s2646_s10, 2  ;;  %s2017_s24 = sand.u32 1, %s2626_s27  }
 0x13a   : > { %s2018_s25 = scalar_lea.sflag [#allocation3], %s2017_s24 }
 0x13b   : > { %p2515_p1 = pnand %p2519_p0, %p2743_p8 }
 0x13d   : > { %p2516_p2 = pneg %p2515_p1 }
 0x13f   : > { %2621 = dma.done.wait (%p2516_p2), %s2018_s25, 1024  }
 0x140   : > { %2623 = vsyncadd (%p2516_p2), %s2018_s25, 4294966272  ;;  %s21_s10 = sadd.s32 1, %s2646_s10   ;;  %s3165_s27 = smov %s2630_s28 }
 0x141   : > { %p18_p3 = scmp.ge.s32.totalorder %s21_s10, 4   ;;  %s3166_s28 = smov %s2634_s29 }
 0x142   : > { %s3167_s29 = smov %s2749_s18  ;;  %s3168_s30 = smov %s2642_s9 }
 0x143   : > { %s3169_s9 = smov %s3171_s13  ;;  %20 = sbr.rel (!%p18_p3) target bundleno = 4 (0x4), region = 110 }
 0x148   :  { %2023 = vsyncpa [#allocation3], 1 }
 0x149   :  { %2025 = vsyncpa [#allocation3 + $0x1], 1 }

</bundles_post_ra>
